<compile_context>
chip_gen: v7x
topology: tpu7x:2x2x1
jax: 0.10.0
libtpu: 0.0.40
codegen_flags: <defaults>
</compile_context>

<pallas_src>
import functools

import jax
import jax.numpy as jnp
import numpy as np
from jax.experimental import pallas as pl


def _update_node_kernel(nodes_ref, w_ref, wlin_ref, bgb_ref, out_ref, *, eps):
    x = nodes_ref[...]                                        # [T, N, C_in]  f32
    w = w_ref[...]                                            # [T, 2N, N]    f32
    t, n, c_in = x.shape
    c_out = wlin_ref.shape[1]

    # (1) Adjacency matmuls: W0@x and W1@x as ONE batched MXU contraction per
    #     task (W0, W1 pre-stacked along rows into a [2N, N] LHS).
    m = jax.lax.dot_general(
        w, x,
        dimension_numbers=(((2,), (1,)), ((0,), (0,))),
        preferred_element_type=jnp.float32)                   # [T, 2N, C_in]

    # (2) Linear on concat([W0@x, W1@x], -1) WITHOUT materializing the concat:
    #     two accumulated batched dots — slices of m are sublane-aligned
    #     (offset n is a multiple of 8), slices of wlin are static and free.
    wlin = wlin_ref[...]                                      # [2*C_in, C_out]
    w0 = jnp.broadcast_to(wlin[:c_in, :], (t, c_in, c_out))   # hoisted once
    w1 = jnp.broadcast_to(wlin[c_in:, :], (t, c_in, c_out))
    dn = (((2,), (1,)), ((0,), (0,)))
    y = jax.lax.dot_general(m[:, :n, :], w0, dimension_numbers=dn,
                            preferred_element_type=jnp.float32)
    y = y + jax.lax.dot_general(m[:, n:, :], w1, dimension_numbers=dn,
                                preferred_element_type=jnp.float32)  # [T,N,C_out]
    y = y + bgb_ref[0:1, :]   # Linear bias (absorbed by BN mean; kept for parity)

    # (3) BatchNorm1d (train mode) over all T*N rows — centered statistics,
    #     folded into a single scale/shift FMA.  All BN math stays in f32.
    inv_cnt = 1.0 / (t * n)
    mean = jnp.sum(y, axis=(0, 1), keepdims=True) * inv_cnt   # [1, 1, C_out]
    centered = y - mean
    var = jnp.sum(centered * centered, axis=(0, 1), keepdims=True) * inv_cnt
    invstd = jax.lax.rsqrt(var + eps)
    scale = bgb_ref[1:2, :] * invstd                          # [1, 1, C_out]
    shift = bgb_ref[2:3, :] - mean * scale

    # (4) Fused output: [BN(Linear(...)) , original nodes] along the last dim.
    out_ref[:, :, :c_out] = y * scale + shift
    out_ref[:, :, c_out:] = x


def update_node_forward(nodes, weights, wa, wb, bias, gamma, beta, eps=1e-5):
    T, N, C_in = nodes.shape
    C_out = wa.shape[1]

    # One-time XLA prep: stack the two adjacency matrices per task into a
    # single [2N, N] LHS, concatenate the two (pre-transposed) Linear halves
    # into one [2*C_in, C_out] RHS, and pack bias/gamma/beta into [3, C_out].
    w_stacked = weights.reshape(T, 2 * N, N)
    wlin = jnp.concatenate([wa, wb], axis=0)
    bgb = jnp.concatenate([bias, gamma, beta], axis=0)

    # Grid-less call: every operand is a single full-array VMEM block and the
    # output already carries the fused [bn, nodes] concat (no wrapper ops).
    # BN couples all T*N rows, so there is no independent axis to shard here;
    # batching multiple independent episode groups would add a "parallel"
    # leading grid axis (second v7x TensorCore) without changing this body.
    # NOTE: at production N the O(N^2) weights block must be tiled with a
    # BlockSpec grid (reduction axis last, per-tile BN stat accumulation) and
    # bf16 MXU operands — v7x's 64 MiB VMEM hits that wall first.
    return pl.pallas_call(
        functools.partial(_update_node_kernel, eps=eps),
        out_shape=jax.ShapeDtypeStruct((T, N, C_out + C_in), jnp.float32),
    )(nodes, w_stacked, wlin, bgb)


def reference_forward(nodes, weights, wa, wb, bias, gamma, beta, eps=1e-5):
    """Pure-JAX mirror of the PyTorch forward (train-mode BatchNorm1d)."""
    T, N, C_in = nodes.shape
    m0 = jnp.einsum('tnm,tmc->tnc', weights[:, 0], nodes)
    m1 = jnp.einsum('tnm,tmc->tnc', weights[:, 1], nodes)
    cat = jnp.concatenate([m0, m1], axis=-1)             # [T, N, 2*C_in]
    flat = cat.reshape(-1, 2 * C_in)                     # [T*N, 2*C_in]
    wlin_t = jnp.concatenate([wa, wb], axis=0)           # [2*C_in, C_out]
    lin = flat @ wlin_t + bias                           # [T*N, C_out]
    mu = jnp.mean(lin, axis=0, keepdims=True)
    var = jnp.mean((lin - mu) ** 2, axis=0, keepdims=True)
    bn = (lin - mu) * jax.lax.rsqrt(var + eps) * gamma + beta
    bn = bn.reshape(T, N, -1)
    return jnp.concatenate([bn, nodes], axis=-1)


if __name__ == "__main__":
    # Small shapes consistent with the module:
    # T tasks, N = n_way*k_shot + n_way*k_query nodes, C_in -> C_out channels.
    T, N, C_in, C_out = 2, 8, 16, 32

    key = jax.random.PRNGKey(0)
    k = jax.random.split(key, 7)
    nodes = jax.random.normal(k[0], (T, N, C_in), dtype=jnp.float32)
    weights = jax.random.normal(k[1], (T, 2, N, N), dtype=jnp.float32) * 0.2

    # Linear params ([C_out, 2*C_in] split + transposed), BatchNorm affine.
    wa = jax.random.normal(k[2], (C_in, C_out), dtype=jnp.float32) * 0.1
    wb = jax.random.normal(k[3], (C_in, C_out), dtype=jnp.float32) * 0.1
    bias = jax.random.normal(k[4], (1, C_out), dtype=jnp.float32) * 0.1
    gamma = 1.0 + 0.1 * jax.random.normal(k[5], (1, C_out), dtype=jnp.float32)
    beta = 0.1 * jax.random.normal(k[6], (1, C_out), dtype=jnp.float32)

    out = update_node_forward(nodes, weights, wa, wb, bias, gamma, beta)
    out = jax.block_until_ready(out)

    ref = reference_forward(nodes, weights, wa, wb, bias, gamma, beta)
    np.testing.assert_allclose(np.asarray(out), np.asarray(ref),
                               rtol=1e-4, atol=1e-4)
    assert out.shape == (T, N, C_out + C_in)
    print("KERNEL_OK")
</pallas_src>

<mosaic_0001>
module attributes {stable_mosaic.version = 11 : i64} {
  func.func @_update_node_kernel(%arg0: memref<2x8x16xf32, #tpu.memory_space<vmem>>, %arg1: memref<2x16x8xf32, #tpu.memory_space<vmem>>, %arg2: memref<32x32xf32, #tpu.memory_space<vmem>>, %arg3: memref<3x32xf32, #tpu.memory_space<vmem>>, %arg4: memref<2x8x48xf32, #tpu.memory_space<vmem>>) attributes {dimension_semantics = [], scalar_prefetch = 0 : i64, scratch_operands = 0 : i64, tpu.core_type = #tpu.core_type<tc>} {
    %c0 = arith.constant 0 : index
    %c0_0 = arith.constant 0 : index
    %c0_1 = arith.constant 0 : index
    %0 = vector.load %arg0[%c0, %c0_0, %c0_1] : memref<2x8x16xf32, #tpu.memory_space<vmem>>, vector<2x8x16xf32>
    %c0_2 = arith.constant 0 : index
    %c0_3 = arith.constant 0 : index
    %c0_4 = arith.constant 0 : index
    %1 = vector.load %arg1[%c0_2, %c0_3, %c0_4] : memref<2x16x8xf32, #tpu.memory_space<vmem>>, vector<2x16x8xf32>
    %cst = arith.constant dense<0.000000e+00> : vector<2x16x16xf32>
    %2 = tpu.matmul %1, %0, %cst {dimension_numbers = #tpu.dot_dimension_numbers<[2], [1], [1], [2], [0, 0, 0, 1, 1, 2], [0], [0]>} : vector<2x16x8xf32>, vector<2x8x16xf32>, vector<2x16x16xf32> -> vector<2x16x16xf32>
    %c0_5 = arith.constant 0 : index
    %c0_6 = arith.constant 0 : index
    %3 = vector.load %arg2[%c0_5, %c0_6] : memref<32x32xf32, #tpu.memory_space<vmem>>, vector<32x32xf32>
    %4 = vector.extract_strided_slice %3 {offsets = [0, 0], sizes = [16, 32], strides = [1, 1]} : vector<32x32xf32> to vector<16x32xf32>
    %5 = vector.shape_cast %4 : vector<16x32xf32> to vector<1x16x32xf32>
    %6 = vector.broadcast %5 : vector<1x16x32xf32> to vector<2x16x32xf32>
    %7 = vector.extract_strided_slice %3 {offsets = [16, 0], sizes = [16, 32], strides = [1, 1]} : vector<32x32xf32> to vector<16x32xf32>
    %8 = vector.shape_cast %7 : vector<16x32xf32> to vector<1x16x32xf32>
    %9 = vector.broadcast %8 : vector<1x16x32xf32> to vector<2x16x32xf32>
    %10 = vector.extract_strided_slice %2 {offsets = [0, 0, 0], sizes = [2, 8, 16], strides = [1, 1, 1]} : vector<2x16x16xf32> to vector<2x8x16xf32>
    %cst_7 = arith.constant dense<0.000000e+00> : vector<2x8x32xf32>
    %11 = tpu.matmul %10, %6, %cst_7 {dimension_numbers = #tpu.dot_dimension_numbers<[2], [1], [1], [2], [0, 0, 0, 1, 1, 2], [0], [0]>} : vector<2x8x16xf32>, vector<2x16x32xf32>, vector<2x8x32xf32> -> vector<2x8x32xf32>
    %12 = vector.extract_strided_slice %2 {offsets = [0, 8, 0], sizes = [2, 8, 16], strides = [1, 1, 1]} : vector<2x16x16xf32> to vector<2x8x16xf32>
    %cst_8 = arith.constant dense<0.000000e+00> : vector<2x8x32xf32>
    %13 = tpu.matmul %12, %9, %cst_8 {dimension_numbers = #tpu.dot_dimension_numbers<[2], [1], [1], [2], [0, 0, 0, 1, 1, 2], [0], [0]>} : vector<2x8x16xf32>, vector<2x16x32xf32>, vector<2x8x32xf32> -> vector<2x8x32xf32>
    %14 = arith.addf %11, %13 : vector<2x8x32xf32>
    %c0_9 = arith.constant 0 : index
    %c0_10 = arith.constant 0 : index
    %15 = vector.load %arg3[%c0_9, %c0_10] : memref<3x32xf32, #tpu.memory_space<vmem>>, vector<1x32xf32>
    %16 = vector.shape_cast %15 : vector<1x32xf32> to vector<1x1x32xf32>
    %17 = vector.broadcast %16 : vector<1x1x32xf32> to vector<2x8x32xf32>
    %18 = arith.addf %14, %17 : vector<2x8x32xf32>
    %cst_11 = arith.constant dense<0.000000e+00> : vector<32xf32>
    %19 = vector.multi_reduction <add>, %18, %cst_11 [0, 1] : vector<2x8x32xf32> to vector<32xf32>
    %20 = vector.shape_cast %19 : vector<32xf32> to vector<1x1x32xf32>
    %cst_12 = arith.constant 6.250000e-02 : f32
    %21 = vector.broadcast %cst_12 : f32 to vector<1x1x32xf32>
    %22 = arith.mulf %20, %21 : vector<1x1x32xf32>
    %23 = vector.broadcast %22 : vector<1x1x32xf32> to vector<2x8x32xf32>
    %24 = arith.subf %18, %23 : vector<2x8x32xf32>
    %25 = arith.mulf %24, %24 : vector<2x8x32xf32>
    %cst_13 = arith.constant dense<0.000000e+00> : vector<32xf32>
    %26 = vector.multi_reduction <add>, %25, %cst_13 [0, 1] : vector<2x8x32xf32> to vector<32xf32>
    %27 = vector.shape_cast %26 : vector<32xf32> to vector<1x1x32xf32>
    %cst_14 = arith.constant 6.250000e-02 : f32
    %28 = vector.broadcast %cst_14 : f32 to vector<1x1x32xf32>
    %29 = arith.mulf %27, %28 : vector<1x1x32xf32>
    %cst_15 = arith.constant 9.99999974E-6 : f32
    %30 = vector.broadcast %cst_15 : f32 to vector<1x1x32xf32>
    %31 = arith.addf %29, %30 : vector<1x1x32xf32>
    %32 = math.rsqrt %31 : vector<1x1x32xf32>
    %c1 = arith.constant 1 : index
    %c0_16 = arith.constant 0 : index
    %33 = vector.load %arg3[%c1, %c0_16] : memref<3x32xf32, #tpu.memory_space<vmem>>, vector<1x32xf32>
    %34 = vector.shape_cast %33 : vector<1x32xf32> to vector<1x1x32xf32>
    %35 = arith.mulf %34, %32 : vector<1x1x32xf32>
    %c2 = arith.constant 2 : index
    %c0_17 = arith.constant 0 : index
    %36 = vector.load %arg3[%c2, %c0_17] : memref<3x32xf32, #tpu.memory_space<vmem>>, vector<1x32xf32>
    %37 = arith.mulf %22, %35 : vector<1x1x32xf32>
    %38 = vector.shape_cast %36 : vector<1x32xf32> to vector<1x1x32xf32>
    %39 = arith.subf %38, %37 : vector<1x1x32xf32>
    %40 = vector.broadcast %35 : vector<1x1x32xf32> to vector<2x8x32xf32>
    %41 = arith.mulf %18, %40 : vector<2x8x32xf32>
    %42 = vector.broadcast %39 : vector<1x1x32xf32> to vector<2x8x32xf32>
    %43 = arith.addf %41, %42 : vector<2x8x32xf32>
    %c0_18 = arith.constant 0 : index
    %c0_19 = arith.constant 0 : index
    %c0_20 = arith.constant 0 : index
    %44 = vector.load %arg4[%c0_18, %c0_19, %c0_20] : memref<2x8x48xf32, #tpu.memory_space<vmem>>, vector<2x8x32xf32>
    tpu.vector_store %arg4[%c0_18, %c0_19, %c0_20], %43 {strides = array<i32>} : memref<2x8x48xf32, #tpu.memory_space<vmem>>, vector<2x8x32xf32>,
    %c0_21 = arith.constant 0 : index
    %c0_22 = arith.constant 0 : index
    %c32 = arith.constant 32 : index
    %45 = vector.load %arg4[%c0_21, %c0_22, %c32] : memref<2x8x48xf32, #tpu.memory_space<vmem>>, vector<2x8x16xf32>
    tpu.vector_store %arg4[%c0_21, %c0_22, %c32], %0 {strides = array<i32>} : memref<2x8x48xf32, #tpu.memory_space<vmem>>, vector<2x8x16xf32>,
    return
  }
}

</mosaic_0001>

<bundles_post_ra>
// kernel: tpu_custom_call.1
= control target key start
LH: loop header
LB: loop body
LE: loop exit
PB: predicated region body
PF: predicated region fallthrough
CT: control target
= control target key end

     0   :  { %vm24_vm0 = vcmask 64512   ;;  %s767_s0 = inlined_call_operand.vmem [shape: f32[2,8,16], index: 0, kind: input, shape index: {}]   ;;  %s768_s1 = inlined_call_operand.vmem [shape: f32[2,16,8], index: 1, kind: input, shape index: {}]   ;;  %s769_s2 = inlined_call_operand.vmem [shape: f32[32,32], index: 2, kind: input, shape index: {}]   ;;  %s770_s3 = inlined_call_operand.vmem [shape: f32[3,32], index: 3, kind: input, shape index: {}]   ;;  %s771_s4 = inlined_call_operand.hbm [shape: f32[2,8,48], index: 4, kind: output, shape index: {}]  }
   0x1   :  { %v18_v0 = vld [vmem:[%s767_s0] sm:$0xff]  ;;  %v19_v1 = vld [vmem:[%s767_s0 + $0x8] sm:$0xff]  ;;  %v22_v3 = vld [vmem:[%s768_s1 + $0x10] sm:$0xff] }
   0x2   :  { %v20_v2 = vld [vmem:[%s768_s1] sm:$0xff]  ;;  %591 = vmatprep.subr.mxu0 %v18_v0  ;;  %596 = vmatprep.subr.mxu1 %v19_v1  ;;  %v21_v4 = vld [vmem:[%s768_s1 + $0x8] sm:$0xff]  ;;  %v23_v5 = vld [vmem:[%s768_s1 + $0x18] sm:$0xff] }
   0x3   :  { %592 = vmatpush3.msra.mxu0 %v18_v0  ;;  %593 = vmatprep.mubr.msk.f32.mxu0 %vm24_vm0, %v20_v2  ;;  %v189_v6 = vld [vmem:[%s769_s2 + $0x10] sm:$0xff]  ;;  %v190_v7 = vld [vmem:[%s769_s2 + $0x18] sm:$0xff] }
   0x4   :  { %9 = vsyncpa [#allocation3], 0  ;;  %597 = vmatpush3.msra.mxu1 %v19_v1  ;;  %598 = vmatprep.mubr.msk.f32.mxu1 %vm24_vm0, %v22_v3  ;;  %v630_v8 = vpack.c.bf16 %v190_v7, %v189_v6  ;;  %v674_v9 = vmov 0.0|0.0   ;;  %vm675_vm1 = vmmov 0   ;;  %v676_v10 = vmov 0.0   ;;  %s677_s1 = smov 32  }
   0x5   :  { %594 = vmatmul.mubr.msk.f32.vlgmr.msra.gmra.mrb[0].mxu0 %vm24_vm0, %v21_v4  ;;  %599 = vmatmul.mubr.msk.f32.vlgmr.msra.gmra.mrb[0].mxu1 %vm24_vm0, %v23_v5  ;;  %v187_v11 = vld [vmem:[%s769_s2] sm:$0xff]  ;;  %v188_v12 = vld [vmem:[%s769_s2 + $0x8] sm:$0xff]  ;;  %vm191_vm2 = vcmask 130048   ;;  %vm491_vm3 = vcmask 261120   ;;  %v523_v56 = vlaneseq  ;;  %s678_s13 = smov [#allocation2]   ;;  %vm545_vm4 = vcmask 392448  }
   0x6   :  { %629 = vmatprep.subr.bf16.mxu0 %v674_v9  ;;  %632 = vmatprep.subr.bf16.mxu1 %v674_v9  ;;  %v636_v13 = vpack.c.bf16 %v188_v12, %v187_v11  ;;  %v572_v23 = vld [vmem:[%s770_s3] ss:$0 sm:$0xff]  ;;  %v518_v58 = vld [vmem:[%s770_s3 + $0x1] sm:$0x1]  ;;  %v520_v62 = vld [vmem:[%s770_s3 + $0x2] sm:$0x1] }
   0x7   :  { %631 = vmatpush3.bf16.msra.mxu0 %v630_v8  ;;  %634 = vmatpush3.bf16.msra.mxu1 %v630_v8  ;;  %v524_v57 = vshrl.u32 %v523_v56, 7  ;;  %s553_s14 = sshll.u32 %s678_s13, 4  ;;  %s554_s14 = int_to_ptr.vmem [resolvable:$true] %s553_s14 }
   0x8   :  { %635 = vmatprep.subr.bf16.mxu0 %v674_v9  ;;  %638 = vmatprep.subr.bf16.mxu1 %v674_v9  ;;  %s650_s3 = scalar_lea.vmem %s554_s14, 256  ;;  %p655_p1 = scmp.lt.s32.totalorder %s554_s14, %s554_s14 }
   0x9   :  { %605 = vmatprep.mubr.msk.f32.mxu0 %vm675_vm1, %v676_v10  ;;  %612 = vmatprep.mubr.msk.f32.mxu1 %vm675_vm1, %v676_v10  ;;  %v525_v59 = vsub.s32 0, %v524_v57  ;;  %p651_p0 = scmp.ne.s32.totalorder %s554_s14, %s650_s3  ;;  %p656_p2 = scmp.lt.s32.totalorder %s650_s3, %s650_s3 }
   0xa   :  { %539 = vrot.lane.b32.xlu0 %v18_v0, %s677_s1 }
   0xb   :  { %p657_p3 = por %p656_p2, %p655_p1 }
   0xd   :  { %p658_p4 = pnand %p657_p3, %p651_p0 }
   0xe   :  { %541 = vrot.lane.b32.xlu0 %v19_v1, %s677_s1 }
  0x7c   :  { %v540_v0 = vpop.permute.xlu0 %539 }
  0x80   :  { %v542_v7 = vpop.permute.xlu0 %541 }
  0xd8   :  { %v595_v14 = vpop.f32.mrb[0].mxu0  ;;  %v600_v15 = vpop.f32.mrb[0].mxu1 }
  0xd9   :  { %v97_v16 = vpop.f32.mrb[1].mxu0  ;;  %v178_v17 = vpop.f32.mrb[1].mxu1  ;;  %606 = vmatmul.mubr.msk.f32.vlgmr.msra.gmra.mrb[2].mxu0 %vm191_vm2, %v595_v14  ;;  %613 = vmatmul.mubr.msk.f32.vlgmr.msra.gmra.mrb[2].mxu1 %vm191_vm2, %v600_v15 }
  0xda   :  { %637 = vmatpush3.bf16.msra.mxu0 %v636_v13  ;;  %640 = vmatpush3.bf16.msra.mxu1 %v636_v13 }
  0xdb   :  { %619 = vmatprep.mubr.msk.f32.mxu0 %vm675_vm1, %v676_v10  ;;  %626 = vmatprep.mubr.msk.f32.mxu1 %vm675_vm1, %v676_v10 }
  0xdd   :  { %620 = vmatmul.mubr.msk.f32.vlgmr.msra.gmra.mrb[4].mxu0 %vm191_vm2, %v97_v16  ;;  %627 = vmatmul.mubr.msk.f32.vlgmr.msra.gmra.mrb[4].mxu1 %vm191_vm2, %v178_v17 }
 0x1ac   :  { %v261_v18 = vpop.f32.mrb[2].mxu0  ;;  %v334_v19 = vpop.f32.mrb[2].mxu1 }
 0x1ad   :  { %v607_v20 = vpop.f32.mrb[3].mxu0  ;;  %v614_v21 = vpop.f32.mrb[3].mxu1 }
 0x1b0   :  { %v407_v22 = vpop.f32.mrb[4].mxu0  ;;  %v480_v24 = vpop.f32.mrb[4].mxu1 }
 0x1b1   :  { %v408_v25 = vadd.f32 %v407_v22, %v261_v18  ;;  %v481_v26 = vadd.f32 %v480_v24, %v334_v19  ;;  %v621_v27 = vpop.f32.mrb[5].mxu0  ;;  %v628_v28 = vpop.f32.mrb[5].mxu1 }
 0x1b3   :  { %v489_v29 = vadd.f32 %v572_v23, %v408_v25  ;;  %v490_v30 = vadd.f32 %v572_v23, %v481_v26 }
 0x1b5   :  { %v492_v31 = vsel %vm491_vm3, %v489_v29, 0.0  ;;  %v493_v32 = vsel %vm491_vm3, %v490_v30, 0.0 }
 0x1b6   :  { %v494_v33 = vadd.f32 %v493_v32, %v492_v31 }
 0x1b8   :  { %v495_v34 = vrot.slane %v494_v33, 4 }
 0x1ba   :  { %v496_v35 = vadd.f32 %v495_v34, %v494_v33 }
 0x1bc   :  { %v497_v36 = vrot.slane %v496_v35, 2 }
 0x1be   :  { %v498_v37 = vadd.f32 %v497_v36, %v496_v35 }
 0x1c0   :  { %v499_v38 = vrot.slane %v498_v37, 1 }
 0x1c2   :  { %v500_v39 = vadd.f32 %v499_v38, %v498_v37 }
 0x1c4   :  { %v501_v40 = vmul.f32 0.0625, %v500_v39 }
 0x1c6   :  { %v502_v41 = vsub.f32 %v489_v29, %v501_v40  ;;  %v503_v42 = vsub.f32 %v490_v30, %v501_v40 }
 0x1c8   :  { %v504_v43 = vmul.f32 %v502_v41, %v502_v41  ;;  %v505_v44 = vmul.f32 %v503_v42, %v503_v42 }
 0x1ca   :  { %v506_v45 = vsel %vm491_vm3, %v504_v43, 0.0  ;;  %v507_v46 = vsel %vm491_vm3, %v505_v44, 0.0 }
 0x1cb   :  { %v508_v47 = vadd.f32 %v507_v46, %v506_v45 }
 0x1cd   :  { %v509_v48 = vrot.slane %v508_v47, 4 }
 0x1cf   :  { %v510_v49 = vadd.f32 %v509_v48, %v508_v47 }
 0x1d1   :  { %v511_v50 = vrot.slane %v510_v49, 2 }
 0x1d3   :  { %v512_v51 = vadd.f32 %v511_v50, %v510_v49 }
 0x1d5   :  { %v513_v52 = vrot.slane %v512_v51, 1 }
 0x1d7   :  { %v514_v53 = vadd.f32 %v513_v52, %v512_v51 }
 0x1d9   :  { %v515_v54 = vmul.f32 0.0625, %v514_v53 }
 0x1db   :  { %v516_v55 = vadd.f32 1e-05, %v515_v54 }
 0x1dd   :  { %648 = vrsqrt.f32 %v516_v55 }
 0x1e7   :  { %v649_v60 = vpop.eup %648 }
 0x1e8   :  { %v519_v61 = vmul.f32 %v649_v60, %v518_v58 }
 0x1ea   :  { %v526_v63 = vrot.slane %v519_v61, %v525_v59  ;;  %v521_v1 = vmul.f32 %v519_v61, %v501_v40 }
 0x1ec   :  { %v528_v2 = vmul.f32 %v526_v63, %v490_v30  ;;  %v522_v3 = vsub.f32 %v520_v62, %v521_v1  ;;  %v527_v4 = vmul.f32 %v526_v63, %v489_v29 }
 0x1ee   :  { %v532_v5 = vrot.slane %v522_v3, %v525_v59 }
 0x1f0   :  { %v533_v6 = vadd.f32 %v532_v5, %v527_v4  ;;  %v534_v8 = vadd.f32 %v532_v5, %v528_v2 }
 0x1f2   :  { %535 = vst.msk [vmem:[#allocation2] sm:$0xff] %vm491_vm3, %v533_v6  ;;  %536 = vst.msk [vmem:[#allocation2 + $0x8] sm:$0xff] %vm491_vm3, %v534_v8 }
 0x1f3   :  { %546 = vst.msk [vmem:[#allocation2] sm:$0xff] %vm545_vm4, %v540_v0  ;;  %547 = vst.msk [vmem:[#allocation2 + $0x8] sm:$0xff] %vm545_vm4, %v542_v7 }
 0x1f4   :  { %661 = shalt.err (!%p658_p4)
}
 0x1f5   :  { %s662_s17 = scalar_lea.hbm %s771_s4, 256 }
 0x1f6   :  { %p663_p5 = scmp.ne.s32.totalorder %s771_s4, %s662_s17  ;;  %p666_p6 = scmp.lt.u32.totalorder %s662_s17, %s771_s4 }
 0x1f8   :  { %p668_p7 = pnand %p666_p6, %p663_p5 }
 0x1fa   :  { %671 = shalt.err (!%p668_p7)
}
 0x1fb   :  { %s679_s22 = smov 128   ;;  %s680_s23 = smov 8  }
 0x1fc   :  { %559 = dma.vmem_to_hbm [thread:$0]  %s554_s14, 256, %s771_s4, [#allocation3], %s679_s22, %s679_s22, %s680_s23  }
 0x1fd   :  { %672 = dma.done.wait [#allocation3], 256  }
 0x1fe   :  { %673 = vsyncadd [#allocation3], 4294967040 }
 0x1ff   :  { %563 = vsyncpa [#allocation3], 1 }

</bundles_post_ra>
